<compile_context>
chip_gen: v7x
topology: tpu7x:2x2x1
jax: 0.10.0
libtpu: 0.0.40
codegen_flags: <defaults>
</compile_context>

<pallas_src>
import numpy as np
import jax
import jax.numpy as jnp
from jax.experimental import pallas as pl
from jax.experimental.pallas import tpu as pltpu

_LANE = 128


def _dis_entangle_kernel(x_ref, cos_ref, sin_ref, o_ref):
    # x_ref: (C, tn) input slab (batch dim squeezed out of the block),
    # cos_ref/sin_ref: (C, C) frequency-scaled DFT matrices,
    # o_ref: (C, tn) float32 output.
    x = x_ref[...].astype(jnp.float32)
    re = jnp.dot(cos_ref[...], x, preferred_element_type=jnp.float32)
    im = jnp.dot(sin_ref[...], x, preferred_element_type=jnp.float32)
    # coef (= freqs**2 / C) is folded into the matrices -> just square & add.
    o_ref[...] = x + re * re + im * im


def dis_entangle(x_nchw, *, target_tn=2048, vmem_budget=40 << 20):
    """x_nchw: (N, C, H, W) array -> (N, C, H, W) float32 (DisEntangle.forward)."""
    N, C, H, W = x_nchw.shape
    S = H * W
    in_itemsize = jnp.dtype(x_nchw.dtype).itemsize

    # ---- constants: frequency-scaled DFT matrices (host-side numpy) ----
    freqs = np.fft.fftfreq(C).astype(np.float64)                   # (C,)
    k = np.arange(C)[:, None]
    c = np.arange(C)[None, :]
    ang = 2.0 * np.pi * k * c / C
    scale = (np.abs(freqs) / np.sqrt(C))[:, None]                  # (C, 1)
    cos_mat = jnp.asarray(np.cos(ang) * scale, dtype=jnp.float32)  # (C, C)
    sin_mat = jnp.asarray(np.sin(ang) * scale, dtype=jnp.float32)  # (C, C)

    # ---- tiling: lane-dense spatial tiles, budgeted for VMEM ----
    def _vmem_est(t):
        # double-buffered input + output tiles, double-buffered cos/sin matrices
        return 2 * C * t * (in_itemsize + 4) + 4 * C * C * 4

    tn = min(target_tn, ((S + _LANE - 1) // _LANE) * _LANE)
    while tn > _LANE and _vmem_est(tn) > vmem_budget:
        tn = max(_LANE, (tn // 2 // _LANE) * _LANE)
    Sp = ((S + tn - 1) // tn) * tn

    # (N, C, H, W) -> (N, C, S): free reshape of a contiguous array, no transpose.
    # Note: input dtype flows through unchanged; the kernel upcasts on load.
    x3d = x_nchw.reshape(N, C, S)
    if Sp != S:
        x3d = jnp.pad(x3d, ((0, 0), (0, 0), (0, Sp - S)))

    vmem_limit = int(min(max(_vmem_est(tn) + (4 << 20), 16 << 20), 48 << 20))

    out = pl.pallas_call(
        _dis_entangle_kernel,
        out_shape=jax.ShapeDtypeStruct((N, C, Sp), jnp.float32),
        grid=(N, Sp // tn),
        in_specs=[
            pl.BlockSpec((None, C, tn), lambda n, j: (n, 0, j)),   # x slab
            pl.BlockSpec((C, C), lambda n, j: (0, 0)),             # scaled cos DFT
            pl.BlockSpec((C, C), lambda n, j: (0, 0)),             # scaled sin DFT
        ],
        out_specs=pl.BlockSpec((None, C, tn), lambda n, j: (n, 0, j)),
        compiler_params=pltpu.CompilerParams(
            dimension_semantics=("parallel", "parallel"),
            vmem_limit_bytes=vmem_limit),
    )(x3d, cos_mat, sin_mat)

    out = out[:, :, :S].reshape(N, C, H, W)
    return out


def _reference(x_nchw):
    # pure-JAX reference mirroring the PyTorch forward
    C = x_nchw.shape[1]
    freqs = jnp.asarray(np.fft.fftfreq(C), dtype=jnp.float32)
    xf = x_nchw.astype(jnp.float32)
    f = jnp.abs(jnp.fft.fftn(xf, axes=[1], norm="ortho"))
    fr = freqs[None, :, None, None]
    return (xf + fr * fr * f * f).astype(jnp.float32)


if __name__ == "__main__":
    key = jax.random.PRNGKey(0)

    # primary test (matches the module's typical small-shape usage)
    N, C, H, W = 2, 4, 16, 16
    x = jax.random.normal(key, (N, C, H, W), dtype=jnp.float32)
    out = jax.block_until_ready(dis_entangle(x))
    ref = _reference(x)
    assert out.shape == (N, C, H, W) and out.dtype == jnp.float32
    assert jnp.allclose(out, ref, atol=1e-4, rtol=1e-4), "mismatch vs reference"

    # second test: non-128-aligned spatial extent exercises the padding path
    N2, C2, H2, W2 = 1, 6, 20, 13
    x2 = jax.random.normal(jax.random.PRNGKey(1), (N2, C2, H2, W2),
                           dtype=jnp.float32)
    out2 = jax.block_until_ready(dis_entangle(x2))
    ref2 = _reference(x2)
    assert out2.shape == (N2, C2, H2, W2) and out2.dtype == jnp.float32
    assert jnp.allclose(out2, ref2, atol=1e-4, rtol=1e-4), "mismatch (padded case)"

    print("KERNEL_OK")
</pallas_src>

<mosaic_0001>
module attributes {stable_mosaic.version = 11 : i64} {
  func.func @_dis_entangle_kernel(%arg0: i32, %arg1: i32, %arg2: memref<1x4x256xf32, #tpu.memory_space<vmem>>, %arg3: memref<4x4xf32, #tpu.memory_space<vmem>>, %arg4: memref<4x4xf32, #tpu.memory_space<vmem>>, %arg5: memref<1x4x256xf32, #tpu.memory_space<vmem>>) attributes {dimension_semantics = [#tpu.dimension_semantics<parallel>, #tpu.dimension_semantics<parallel>], iteration_bounds = array<i64: 2, 1>, scalar_prefetch = 0 : i64, scratch_operands = 0 : i64, tpu.core_type = #tpu.core_type<tc>, window_params = [{transform_indices = @transform_0, window_bounds = array<i64: 1, 4, 256>}, {pipeline_mode = #tpu.pipeline_mode<synchronous>, transform_indices = @transform_1, window_bounds = array<i64: 4, 4>}, {pipeline_mode = #tpu.pipeline_mode<synchronous>, transform_indices = @transform_2, window_bounds = array<i64: 4, 4>}, {transform_indices = @transform_3, window_bounds = array<i64: 1, 4, 256>}]} {
    %c0 = arith.constant 0 : index
    %c0_0 = arith.constant 0 : index
    %c0_1 = arith.constant 0 : index
    %0 = vector.load %arg2[%c0, %c0_0, %c0_1] : memref<1x4x256xf32, #tpu.memory_space<vmem>>, vector<1x4x256xf32>
    %1 = vector.shape_cast %0 : vector<1x4x256xf32> to vector<4x256xf32>
    %c0_2 = arith.constant 0 : index
    %c0_3 = arith.constant 0 : index
    %2 = vector.load %arg3[%c0_2, %c0_3] : memref<4x4xf32, #tpu.memory_space<vmem>>, vector<4x4xf32>
    %cst = arith.constant dense<0.000000e+00> : vector<4x256xf32>
    %3 = tpu.matmul %2, %1, %cst {dimension_numbers = #tpu.dot_dimension_numbers<[1], [0], [0], [1], [0, 0, 1, 1], [], []>} : vector<4x4xf32>, vector<4x256xf32>, vector<4x256xf32> -> vector<4x256xf32>
    %c0_4 = arith.constant 0 : index
    %c0_5 = arith.constant 0 : index
    %4 = vector.load %arg4[%c0_4, %c0_5] : memref<4x4xf32, #tpu.memory_space<vmem>>, vector<4x4xf32>
    %cst_6 = arith.constant dense<0.000000e+00> : vector<4x256xf32>
    %5 = tpu.matmul %4, %1, %cst_6 {dimension_numbers = #tpu.dot_dimension_numbers<[1], [0], [0], [1], [0, 0, 1, 1], [], []>} : vector<4x4xf32>, vector<4x256xf32>, vector<4x256xf32> -> vector<4x256xf32>
    %6 = arith.mulf %3, %3 : vector<4x256xf32>
    %7 = arith.addf %1, %6 : vector<4x256xf32>
    %8 = arith.mulf %5, %5 : vector<4x256xf32>
    %9 = arith.addf %7, %8 : vector<4x256xf32>
    %c0_7 = arith.constant 0 : index
    %c0_8 = arith.constant 0 : index
    %c0_9 = arith.constant 0 : index
    %10 = vector.load %arg5[%c0_7, %c0_8, %c0_9] : memref<1x4x256xf32, #tpu.memory_space<vmem>>, vector<1x4x256xf32>
    %11 = vector.shape_cast %10 : vector<1x4x256xf32> to vector<4x256xf32>
    %12 = vector.shape_cast %9 : vector<4x256xf32> to vector<1x4x256xf32>
    tpu.vector_store %arg5[%c0_7, %c0_8, %c0_9], %12 {strides = array<i32>} : memref<1x4x256xf32, #tpu.memory_space<vmem>>, vector<1x4x256xf32>,
    return
  }
  func.func @transform_0(%arg0: i32, %arg1: i32) -> (i32, i32, i32) {
    %c0_i32 = arith.constant 0 : i32
    %c0_i32_0 = arith.constant 0 : i32
    return %arg0, %c0_i32, %arg1 : i32, i32, i32
  }
  func.func @transform_1(%arg0: i32, %arg1: i32) -> (i32, i32) {
    %c0_i32 = arith.constant 0 : i32
    %c0_i32_0 = arith.constant 0 : i32
    %c0_i32_1 = arith.constant 0 : i32
    return %c0_i32, %c0_i32_0 : i32, i32
  }
  func.func @transform_2(%arg0: i32, %arg1: i32) -> (i32, i32) {
    %c0_i32 = arith.constant 0 : i32
    %c0_i32_0 = arith.constant 0 : i32
    %c0_i32_1 = arith.constant 0 : i32
    return %c0_i32, %c0_i32_0 : i32, i32
  }
  func.func @transform_3(%arg0: i32, %arg1: i32) -> (i32, i32, i32) {
    %c0_i32 = arith.constant 0 : i32
    %c0_i32_0 = arith.constant 0 : i32
    return %arg0, %c0_i32, %arg1 : i32, i32, i32
  }
}

</mosaic_0001>

<bundles_post_ra>
// kernel: tpu_custom_call.1
= control target key start
LH: loop header
LB: loop body
LE: loop exit
PB: predicated region body
PF: predicated region fallthrough
CT: control target
= control target key end

     0   :  { %8 = vsyncpa [#allocation3], 0  ;;  %s998_s0 = inlined_call_operand.hbm [shape: f32[2,4,256], index: 0, kind: input, shape index: {}]   ;;  %s999_s1 = inlined_call_operand.hbm [shape: f32[4,4], index: 1, kind: input, shape index: {}]   ;;  %s1000_s2 = inlined_call_operand.vmem [shape: f32[4,4], index: 2, kind: input, shape index: {}]   ;;  %s1001_s3 = inlined_call_operand.hbm [shape: f32[2,4,256], index: 3, kind: output, shape index: {}]  }
   0x1   :  { %10 = vsyncpa [#allocation3 + $0x1], 0 }
   0x2   :  { %11 = vsyncpa [#allocation6], 0 }
   0x3   :  { %12 = vsyncpa [#allocation4], 0 }
   0x4   :  { %14 = vsyncpa [#allocation4 + $0x1], 0  ;;  %s775_s12 = smov 0   ;;  %s777_s13 = smov 0  }
   0x5   :  { %s779_s14 = smov 0   ;;  %s781_s15 = smov 0  }
   0x6   :  { %s783_s16 = smov 0   ;;  %s785_s17 = smov 0  }
   0x7 LB: > { %s505_s18 = sadd.s32 4294967295, %s749_s17   ;;  %s506_s19 = sadd.s32 4294967294, %s749_s17   ;;  %s749_s17 = sphi %s785_s17, %s20_s17   ;;  %s745_s16 = sphi %s783_s16, %s1026_s16   ;;  %s741_s15 = sphi %s781_s15, %s1025_s15   ;;  %s737_s14 = sphi %s779_s14, %s1024_s14   ;;  %s733_s13 = sphi %s777_s13, %s1023_s13   ;;  %s729_s12 = sphi %s775_s12, %s1022_s12  }
   0x8   : > { %p54_p0 = scmp.ne.s32.totalorder %s733_s13, %s729_s12  ;;  %p809_p1 = scmp.eq.s32.totalorder %s505_s18, 0 }
   0x9   : > { %p813_p2 = scmp.eq.s32.totalorder %s505_s18, 1  ;;  %p128_p3 = scmp.eq.s32.totalorder %s506_s19, 1 }
   0xa   : > { %s1006_s20 = scalar_select %p809_p1, 1, 0 }
   0xb   : > { %s1007_s21 = scalar_select %p813_p2, 1, 0 }
   0xc   : > { %p819_p4 = por %p809_p1, %p54_p0  ;;  %p507_p5 = scmp.ge.s32.totalorder %s749_s17, 1 }
   0xd   : > { %p824_p6 = por %p128_p3, %p54_p0  ;;  %p135_p7 = scmp.lt.s32.totalorder %s749_s17, 3 }
   0xe   : > { %s1008_s22 = scalar_select %p819_p4, 1, 0 }
   0xf   : > { %s1009_s23 = scalar_select %p824_p6, 1, 0 }
  0x10   : > { %p829_p8 = pnand %p507_p5, %p135_p7  ;;  %s751_s25 = smov [#allocation5]  }
  0x11   : > { %s148_s26 = sshll.u32 %s751_s25, 4  ;;  %s32_s28 = sadd.s32 1, %s745_s16  ;;  %s149_s26 = int_to_ptr.vmem [resolvable:$true] %s148_s26 }
  0x12   : > { %s1010_s24 = scalar_select %p829_p8, 1, 0 }
  0x13   : > { %p538_p10 = pneg %p829_p8  ;;  %s41_s29 = sadd.s32 1, %s737_s14 }
  0x14   : > { %p844_p12 = scmp.ge.s32.totalorder %s32_s28, 2  ;;  %s605_s6 = scalar_lea.hbm %s999_s1, 64 }
  0x15   : > { %p838_p11 = pnand %p538_p10, %p809_p1  ;;  %p606_p13 = scmp.ne.s32.totalorder %s999_s1, %s605_s6 }
  0x16   : > { %s1012_s30 = scalar_select %p844_p12, 1, 0 }
  0x17   : > { %p607_p0 = pneg %p838_p11  ;;  %p612_p7 = scmp.lt.u32.totalorder %s605_s6, %s999_s1 }
  0x19   : > { %p608_p3 = pnand %p607_p0, %p606_p13 }
  0x1b   : > { %p609_p5 = pneg %p608_p3 }
  0x1d   : > { %p614_p10 = pnand %p612_p7, %p609_p5 }
  0x1f   : > { %617 = shalt.err (!%p614_p10)
}
  0x20   : > { %s618_s11 = scalar_lea.vmem %s149_s26, 64  ;;  %p626_p4 = scmp.lt.s32.totalorder %s149_s26, %s149_s26 }
  0x21   : > { %p619_p9 = scmp.ne.s32.totalorder %s149_s26, %s618_s11  ;;  %p627_p8 = scmp.lt.s32.totalorder %s618_s11, %s618_s11 }
  0x23   : > { %p621_p6 = pnand %p619_p9, %p607_p0  ;;  %p628_p2 = por %p627_p8, %p626_p4 }
  0x25   : > { %p622_p1 = pneg %p621_p6 }
  0x27   : > { %p629_p12 = pnand %p628_p2, %p622_p1 }
  0x29   : > { %632 = shalt.err (!%p629_p12)
}
  0x2a   : > { %541 = dma.hbm_to_vmem [thread:$0]  (!%p838_p11), %s999_s1, 64, %s149_s26, [#allocation6]  }
  0x2b   : > { %p1013_p4 = scmp.ne.s32.totalorder %s1012_s30, 0  ;;  %p48_p1 = scmp.ne.s32.totalorder %s737_s14, %s733_s13 }
  0x2c   : > { %p49_p2 = scmp.eq.s32.totalorder %s749_s17, 0  ;;  %p551_p6 = scmp.lt.s32.totalorder %s749_s17, 2 }
  0x2d   : > { %s1028_s28 = smov (%p1013_p4, %s32_s28), 0  ;;  %p1014_p12 = scmp.ne.s32.totalorder %s1007_s21, 0 }
  0x2e   : > { %s36_s25 = ssub.s32 %s745_s16, %s1028_s28  ;;  %p50_p9 = por %p49_p2, %p48_p1 }
  0x2f   : > { %p39_p8 = scmp.eq.s32.totalorder %s36_s25, 0  ;;  %p876_p13 = por %p1014_p12, %p48_p1 }
  0x30   : > { %s162_s4 = sand.u32 1, %s737_s14   ;;  %s528_s30 = sshll.u32 %s745_s16, 7 }
  0x31   : > { %s884_s5 = scalar_select %p39_p8, %s737_s14, %s41_s29  }
  0x32   : > { %s510_s26 = sshll.u32 %s162_s4, 3  ;;  %s890_s8 = scalar_lea.hbm %s998_s0, %s528_s30 }
  0x33   : > { %s166_s21 = scalar_lea.vmem [#allocation2], %s510_s26  ;;  %p894_p11 = pnand %p551_p6, %p50_p9 }
  0x34   : > { %s176_s9 = sshll.u32 %s166_s21, 4  ;;  %s163_s29 = scalar_lea.sflag [#allocation3], %s162_s4  ;;  %s892_s9 = int_to_ptr.vmem [resolvable:$true] %s176_s9 }
  0x35   : > { %s633_s11 = scalar_lea.hbm %s890_s8, 128  ;;  %p635_p3 = pneg %p894_p11 }
  0x36   : > { %p634_p0 = scmp.ne.s32.totalorder %s890_s8, %s633_s11  ;;  %s638_s25 = scalar_lea.hbm %s998_s0, 256 }
  0x37   : > { %p639_p10 = scmp.lt.u32.totalorder %s890_s8, %s998_s0  ;;  %p640_p4 = scmp.lt.u32.totalorder %s638_s25, %s633_s11 }
  0x38   : > { %p636_p5 = pnand %p635_p3, %p634_p0  ;;  %p642_p2 = scmp.lt.u32.totalorder %s633_s11, %s890_s8 }
  0x39   : > { %p641_p1 = por %p640_p4, %p639_p10 }
  0x3a   : > { %p637_p7 = pneg %p636_p5 }
  0x3b   : > { %p643_p6 = por %p642_p2, %p641_p1 }
  0x3d   : > { %p644_p8 = pnand %p643_p6, %p637_p7 }
  0x3f   : > { %647 = shalt.err (!%p644_p8)
}
  0x40   : > { %s648_s4 = scalar_lea.vmem %s892_s9, 128  ;;  %s752_s6 = smov [#allocation2]  }
  0x41   : > { %p649_p9 = scmp.ne.s32.totalorder %s892_s9, %s648_s4  ;;  %s653_s7 = sshll.u32 %s752_s6, 4  ;;  %s654_s7 = int_to_ptr.vmem [resolvable:$false] %s653_s7 }
  0x42   : > { %s655_s21 = scalar_lea.vmem %s654_s7, 256  ;;  %p656_p5 = scmp.lt.s32.totalorder %s892_s9, %s654_s7 }
  0x43   : > { %p651_p12 = pnand %p649_p9, %p635_p3  ;;  %p657_p10 = scmp.lt.s32.totalorder %s655_s21, %s648_s4 }
  0x45   : > { %p652_p0 = pneg %p651_p12  ;;  %p658_p4 = por %p657_p10, %p656_p5 }
  0x47   : > { %p659_p1 = pnand %p658_p4, %p652_p0 }
  0x49   : > { %662 = shalt.err (!%p659_p1)
}
  0x4a   : > { %545 = dma.hbm_to_vmem [thread:$0]  (!%p894_p11), %s890_s8, 128, %s892_s9, %s163_s29  }
  0x4b   : > { %p1017_p7 = scmp.ne.s32.totalorder %s1010_s24, 0 }
  0x4c   : > { %s926_s11 = sand.u32 (!%p1017_p7), 1, %s733_s13   ;;  %p1018_p3 = scmp.ne.s32.totalorder (!%p1017_p7), %s1008_s22, 0 }
  0x4d   : > { %185 = sbr.rel (%p1017_p7) target bundleno = 328 (0x148), region = 32  ;;  %s514_s18 = sshll.u32 (!%p1017_p7), %s926_s11, 3 }
  0x4e   : > { %s188_s19 = scalar_lea.sflag (!%p1017_p7), [#allocation3], %s926_s11  ;;  %s191_s25 = scalar_lea.vmem (!%p1017_p7), [#allocation2], %s514_s18 }
  0x54   : > { %716 = dma.done.wait (%p1018_p3), %s188_s19, 128  }
  0x55   : > { %718 = vsyncadd (%p1018_p3), %s188_s19, 4294967168  ;;  %p1019_p11 = scmp.ne.s32.totalorder %s1006_s20, 0 }
  0x57   : > { %720 = dma.done.wait (%p1019_p11), [#allocation6], 64  }
  0x58   : > { %722 = vsyncadd (%p1019_p11), [#allocation6], 4294967232  ;;  %v753_v0 = vmov 0.0   ;;  %v220_v1 = vld [vmem:[%s191_s25] sm:$0xff]  ;;  %vm228_vm0 = vcmask 1043456   ;;  %vm224_vm1 = vcmask 31744  }
  0x59   : > { %297 = vmatprep.mubr.f32.mxu0 %v753_v0  ;;  %372 = vmatprep.mubr.f32.mxu1 %v753_v0  ;;  %v223_v2 = vcombine.high %v220_v1, %v220_v1  ;;  %v221_v3 = vld [vmem:[#allocation5] sm:$0xf]  ;;  %v304_v4 = vld [vmem:[%s1000_s2] sm:$0xf]  ;;  %s529_s20 = sshll.u32 %s741_s15, 7  ;;  %s217_s22 = scalar_lea.vmem [#allocation7], %s514_s18 }
  0x5a   : > { %s411_s9 = sshll.u32 %s217_s22, 4  ;;  %s949_s26 = scalar_lea.hbm %s1001_s3, %s529_s20  ;;  %s951_s9 = int_to_ptr.vmem [resolvable:$true] %s411_s9 }
  0x5b   : > { %517 = vmatprep.subr.msk.mxu0 %vm228_vm0, %v223_v2  ;;  %520 = vmatprep.subr.msk.mxu1 %vm228_vm0, %v223_v2  ;;  %s395_s30 = scalar_lea.sflag [#allocation4], %s926_s11  ;;  %s663_s4 = scalar_lea.vmem %s951_s9, 128 }
  0x5c   : > { %518 = vmatpush1.msk.msra.mxu0 %vm228_vm0, %v220_v1  ;;  %521 = vmatpush1.msk.msra.mxu1 %vm228_vm0, %v220_v1  ;;  %p664_p2 = scmp.ne.s32.totalorder %s951_s9, %s663_s4  ;;  %s754_s15 = smov [#allocation7]  }
  0x5d   : > { %519 = vmatmul.mubr.msk.f32.vlgmr.msra.gmra.mrb[0].mxu0 %vm224_vm1, %v221_v3  ;;  %522 = vmatmul.mubr.msk.f32.vlgmr.msra.gmra.mrb[0].mxu1 %vm224_vm1, %v304_v4  ;;  %s667_s6 = sshll.u32 %s754_s15, 4  ;;  %s668_s6 = int_to_ptr.vmem [resolvable:$false] %s667_s6 }
  0x5e   : > { %p665_p6 = pnand %p664_p2, %p876_p13  ;;  %s669_s7 = scalar_lea.vmem %s668_s6, 256 }
  0x5f   : > { %p670_p9 = scmp.lt.s32.totalorder %s951_s9, %s668_s6  ;;  %p671_p12 = scmp.lt.s32.totalorder %s669_s7, %s663_s4 }
  0x60   : > { %p666_p8 = pneg %p665_p6 }
  0x61   : > { %p672_p0 = por %p671_p12, %p670_p9 }
  0x63   : > { %p673_p5 = pnand %p672_p0, %p666_p8 }
 0x130   : > { %v299_v5 = vpop.f32.mrb[0].mxu0  ;;  %v374_v6 = vpop.f32.mrb[0].mxu1 }
 0x131   : > { %v379_v7 = vmul.f32 %v299_v5, %v299_v5  ;;  %v301_v8 = vpop.f32.mrb[1].mxu0  ;;  %v386_v9 = vmul.f32 %v374_v6, %v374_v6  ;;  %v376_v10 = vpop.f32.mrb[1].mxu1 }
 0x132   : > { %v380_v11 = vmul.f32 %v301_v8, %v301_v8  ;;  %v387_v12 = vmul.f32 %v376_v10, %v376_v10 }
 0x134   : > { %v383_v13 = vcombine.low %v379_v7, %v380_v11  ;;  %v390_v14 = vcombine.low %v386_v9, %v387_v12 }
 0x136   : > { %v385_v15 = vadd.f32 %v383_v13, %v220_v1 }
 0x138   : > { %v392_v16 = vadd.f32 %v390_v14, %v385_v15 }
 0x13a   : > { %393 = vst [vmem:[%s217_s22] sm:$0xff] %v392_v16 }
 0x13b   : > { %676 = shalt.err (!%p673_p5)
}
 0x13c   : > { %s677_s21 = scalar_lea.hbm %s949_s26, 128  ;;  %s681_s19 = scalar_lea.hbm %s1001_s3, 256 }
 0x13d   : > { %p678_p10 = scmp.ne.s32.totalorder %s949_s26, %s677_s21  ;;  %p682_p7 = scmp.lt.u32.totalorder %s949_s26, %s1001_s3 }
 0x13e   : > { %p683_p3 = scmp.lt.u32.totalorder %s681_s19, %s677_s21  ;;  %p685_p2 = scmp.lt.u32.totalorder %s677_s21, %s949_s26 }
 0x13f   : > { %p679_p4 = pnand %p678_p10, %p876_p13 }
 0x140   : > { %p684_p11 = por %p683_p3, %p682_p7 }
 0x141   : > { %p680_p1 = pneg %p679_p4 }
 0x142   : > { %p686_p6 = por %p685_p2, %p684_p11 }
 0x144   : > { %p687_p8 = pnand %p686_p6, %p680_p1 }
 0x146   : > { %690 = shalt.err (!%p687_p8)
}
 0x147   : > { %536 = dma.vmem_to_hbm [thread:$0]  (%p876_p13), %s951_s9, 128, %s949_s26, %s395_s30  }
 0x148 PF: > { %s423_s8 = sand.u32 1, %s729_s12   ;;  %p1020_p9 = scmp.ne.s32.totalorder %s1009_s23, 0 }
 0x149   : > { %p1021_p12 = scmp.ge.s32.totalorder %s749_s17, 2  ;;  %s424_s20 = scalar_lea.sflag [#allocation4], %s423_s8 }
 0x14b   : > { %p547_p0 = pnand %p1021_p12, %p1020_p9 }
 0x14d   : > { %724 = dma.done.wait (!%p547_p0), %s424_s20, 128  }
 0x14e   : > { %726 = vsyncadd (!%p547_p0), %s424_s20, 4294967168  ;;  %s20_s17 = sadd.s32 1, %s749_s17   ;;  %s1022_s12 = smov %s733_s13 }
 0x14f   : > { %p17_p5 = scmp.ge.s32.totalorder %s20_s17, 4   ;;  %s1023_s13 = smov %s737_s14 }
 0x150   : > { %s1024_s14 = smov %s884_s5  ;;  %s1025_s15 = smov %s745_s16 }
 0x151   : > { %s1026_s16 = smov %s1028_s28  ;;  %19 = sbr.rel (!%p17_p5) target bundleno = 7 (0x7), region = 81 }
 0x158   :  { %429 = vsyncpa [#allocation3], 1 }
 0x159   :  { %431 = vsyncpa [#allocation3 + $0x1], 1 }
 0x15a   :  { %432 = vsyncpa [#allocation6], 1 }
 0x15b   :  { %433 = vsyncpa [#allocation4], 1 }
 0x15c   :  { %435 = vsyncpa [#allocation4 + $0x1], 1 }

</bundles_post_ra>
